<compile_context>
chip_gen: v6e
topology: v6e:2x2x1
jax: 0.10.0
libtpu: 0.0.40
codegen_flags: <defaults>
</compile_context>

<pallas_src>
import jax
import jax.numpy as jnp
from jax.experimental import pallas as pl
from jax.experimental.pallas import tpu as pltpu


def _make_dqn_kernel(n_hidden):
    """Fused head (n_hidden x Linear+ReLU) + pi (Linear -> 1), transposed layout.

    Activations are kept as (features, TILE_B) with the batch tile on the lane
    axis: bias/ReLU are lane-dense VPU work, and the (1, TILE_B) output block is
    a contiguous lane-dense store.
    """
    def kernel(*refs):
        x_ref = refs[0]                                     # (feat, TILE_B) bf16
        o_ref = refs[-1]                                    # (1, TILE_B) f32
        bpi_ref = refs[-2]                                  # (1,) f32 in SMEM
        wpi_ref = refs[-3]                                  # (H_last, 1) f32

        h = x_ref[...]
        for l in range(n_hidden):
            w_ref = refs[1 + 2 * l]                         # (H_out, H_in) bf16
            b_ref = refs[2 + 2 * l]                         # (H_out, 1) f32
            a = jnp.dot(w_ref[...], h, preferred_element_type=jnp.float32)
            a = jnp.maximum(a + b_ref[...], 0.0)            # f32, lane-dense VPU
            h = a.astype(jnp.bfloat16) if l + 1 < n_hidden else a

        # pi projection on VPU + XLU (no 1-row MXU matmul): broadcast the
        # (H_last, 1) weight column over lanes, reduce over the sublane axis.
        y = jnp.sum(h * wpi_ref[...], axis=0, keepdims=True)   # (1, TILE_B) f32
        o_ref[...] = (y + bpi_ref[0]).astype(o_ref.dtype)
    return kernel


def dqn_net_s_forward(obs, params, obs_feat_dim, tile_b=4096):
    """Forward pass of DqnNet_S.

    obs: any shape whose trailing dims flatten to obs_feat_dim
         (PyTorch does obs.reshape(-1, self.obs_shape)).
    Returns: (batch, 1) float32, same as self.pi(self.head(obs)).
    """
    n_hidden = sum(1 for k in params if k.startswith("w") and k.endswith("t"))

    # Flatten + transpose to (feat, B) and stream as bf16: lane-dense x blocks,
    # no in-kernel XLU transpose, half the per-element HBM traffic.
    # TODO(synk): in a real pipeline fuse this transpose/cast into the upstream
    # producer of `obs` so it is not a standalone XLA pass.
    xt = obs.reshape(-1, obs_feat_dim).T.astype(jnp.bfloat16)     # (feat, b)
    b = xt.shape[1]

    # Batch tile: multiple of 128 (lane axis of the (1, TILE_B) output block).
    # Large default amortizes per-step overhead; shrink only for small batches,
    # and keep >= 2 grid steps when the batch allows it so the "parallel" axis
    # can shard across both TensorCores on v7x (harmless on v5e/v6e).
    n128 = pl.cdiv(b, 128)
    tiles_per_step = min(max(tile_b // 128, 1), n128)
    if n128 >= 2:
        tiles_per_step = min(tiles_per_step, max(1, n128 // 2))
    tile_b = tiles_per_step * 128
    b_pad = pl.cdiv(b, tile_b) * tile_b
    if b_pad != b:
        xt = jnp.pad(xt, ((0, 0), (0, b_pad - b)))

    # f32 master weights; cast hidden-layer matmul operands to bf16 at the call
    # boundary (weights are ~KiB-scale, negligible). pi column / biases stay f32.
    ws = [params[f"w{l + 1}t"].astype(jnp.bfloat16) for l in range(n_hidden)]
    bs = [params[f"b{l + 1}"] for l in range(n_hidden)]
    wpi_col = params["wpi_col"]
    bpi = params["bpi"]

    # Weights/biases: full-array blocks with constant index_map -> VMEM-resident
    # across all batch tiles (no re-DMA per grid step).
    resident = lambda a: pl.BlockSpec(a.shape, lambda i: (0,) * a.ndim)

    in_specs = [pl.BlockSpec((obs_feat_dim, tile_b), lambda i: (0, i))]  # x tile
    args = [xt]
    for w, bias in zip(ws, bs):
        in_specs += [resident(w), resident(bias)]
        args += [w, bias]
    in_specs += [resident(wpi_col),
                 pl.BlockSpec(memory_space=pltpu.MemorySpace.SMEM)]      # bpi
    args += [wpi_col, bpi]

    out = pl.pallas_call(
        _make_dqn_kernel(n_hidden),
        out_shape=jax.ShapeDtypeStruct((1, b_pad), jnp.float32),
        grid_spec=pltpu.PrefetchScalarGridSpec(
            num_scalar_prefetch=0,
            grid=(b_pad // tile_b,),
            in_specs=in_specs,
            out_specs=pl.BlockSpec((1, tile_b), lambda i: (0, i)),
        ),
        compiler_params=pltpu.CompilerParams(
            dimension_semantics=("parallel",)),
    )(*args)

    return out[0, :b].reshape(b, 1)


def init_params(key, in_dim, net_arch):
    """Xavier-uniform init (gain_type='xavier'); f32 master weights.

    Hidden weights are stored transposed (out_features, in_features) so the
    kernel computes W @ x_t directly on the MXU; biases are (out, 1) columns
    for the transposed activation layout. The pi layer is stored as an
    (H_last, 1) column + scalar bias for the VPU-side projection.
    """
    dims = [in_dim] + list(net_arch)
    n_hidden = len(net_arch)
    keys = jax.random.split(key, 2 * (n_hidden + 1))
    params = {}
    for i, (d_in, d_out) in enumerate(zip(dims[:-1], dims[1:])):
        limit = (6.0 / (d_in + d_out)) ** 0.5
        params[f"w{i + 1}t"] = jax.random.uniform(
            keys[2 * i], (d_out, d_in), jnp.float32, -limit, limit)
        blim = 1.0 / (d_in ** 0.5)
        params[f"b{i + 1}"] = jax.random.uniform(
            keys[2 * i + 1], (d_out, 1), jnp.float32, -blim, blim)
    # pi: fc_sizes[-1] -> 1
    d_in = dims[-1]
    limit = (6.0 / (d_in + 1)) ** 0.5
    params["wpi_col"] = jax.random.uniform(keys[-2], (d_in, 1), jnp.float32,
                                           -limit, limit)
    blim = 1.0 / (d_in ** 0.5)
    params["bpi"] = jax.random.uniform(keys[-1], (1,), jnp.float32,
                                       -blim, blim)
    return params


if __name__ == "__main__":
    key = jax.random.PRNGKey(0)
    k_obs, k_par = jax.random.split(key)

    # Module config: obs_shape=(2, 8) -> self.obs_shape = 16, net_arch=[32, 32]
    obs_shape = (2, 8)
    net_arch = [32, 32]
    batch = 8
    obs_feat_dim = obs_shape[0] * obs_shape[1]

    obs = jax.random.normal(k_obs, (batch,) + obs_shape, jnp.float32)
    params = init_params(k_par, obs_feat_dim, net_arch)

    out = dqn_net_s_forward(obs, params, obs_feat_dim)
    jax.block_until_ready(out)

    # Pure-JAX float32 reference. The kernel uses bf16 matmul operands with
    # f32 accumulation, so compare with a loose tolerance.
    x = obs.reshape(-1, obs_feat_dim).astype(jnp.float32)
    h = x
    for l in range(len(net_arch)):
        h = jnp.maximum(h @ params[f"w{l + 1}t"].T + params[f"b{l + 1}"].T, 0.0)
    ref = h @ params["wpi_col"] + params["bpi"][None, :]

    assert out.shape == (batch, 1)
    assert bool(jnp.all(jnp.isfinite(out)))
    err = float(jnp.max(jnp.abs(out - ref)))
    assert jnp.allclose(out, ref, atol=5e-2, rtol=5e-2), f"max abs err = {err}"

    print("KERNEL_OK")
</pallas_src>

<mosaic_0001>
module attributes {stable_mosaic.version = 11 : i64} {
  func.func @kernel(%arg0: i32, %arg1: memref<16x128xbf16, #tpu.memory_space<vmem>>, %arg2: memref<32x16xbf16, #tpu.memory_space<vmem>>, %arg3: memref<32x1xf32, #tpu.memory_space<vmem>>, %arg4: memref<32x32xbf16, #tpu.memory_space<vmem>>, %arg5: memref<32x1xf32, #tpu.memory_space<vmem>>, %arg6: memref<32x1xf32, #tpu.memory_space<vmem>>, %arg7: memref<1xf32, #tpu.memory_space<smem>>, %arg8: memref<1x128xf32, #tpu.memory_space<vmem>>) attributes {dimension_semantics = [#tpu.dimension_semantics<parallel>], iteration_bounds = array<i64: 1>, scalar_prefetch = 0 : i64, scratch_operands = 0 : i64, tpu.core_type = #tpu.core_type<tc>, window_params = [{transform_indices = @transform_0, window_bounds = array<i64: 16, 128>}, {pipeline_mode = #tpu.pipeline_mode<synchronous>, transform_indices = @transform_1, window_bounds = array<i64: 32, 16>}, {pipeline_mode = #tpu.pipeline_mode<synchronous>, transform_indices = @transform_2, window_bounds = array<i64: 32, 1>}, {pipeline_mode = #tpu.pipeline_mode<synchronous>, transform_indices = @transform_3, window_bounds = array<i64: 32, 32>}, {pipeline_mode = #tpu.pipeline_mode<synchronous>, transform_indices = @transform_4, window_bounds = array<i64: 32, 1>}, {pipeline_mode = #tpu.pipeline_mode<synchronous>, transform_indices = @transform_5, window_bounds = array<i64: 32, 1>}, {transform_indices = @transform_6, window_bounds = array<i64: 1>}, {transform_indices = @transform_7, window_bounds = array<i64: 1, 128>}]} {
    %c0 = arith.constant 0 : index
    %c0_0 = arith.constant 0 : index
    %0 = vector.load %arg1[%c0, %c0_0] : memref<16x128xbf16, #tpu.memory_space<vmem>>, vector<16x128xbf16>
    %c0_1 = arith.constant 0 : index
    %c0_2 = arith.constant 0 : index
    %1 = vector.load %arg2[%c0_1, %c0_2] : memref<32x16xbf16, #tpu.memory_space<vmem>>, vector<32x16xbf16>
    %cst = arith.constant dense<0.000000e+00> : vector<32x128xf32>
    %2 = tpu.matmul %1, %0, %cst {dimension_numbers = #tpu.dot_dimension_numbers<[1], [0], [0], [1], [0, 0, 1, 1], [], []>} : vector<32x16xbf16>, vector<16x128xbf16>, vector<32x128xf32> -> vector<32x128xf32>
    %c0_3 = arith.constant 0 : index
    %c0_4 = arith.constant 0 : index
    %3 = vector.load %arg3[%c0_3, %c0_4] : memref<32x1xf32, #tpu.memory_space<vmem>>, vector<32x1xf32>
    %4 = vector.broadcast %3 : vector<32x1xf32> to vector<32x128xf32>
    %5 = arith.addf %2, %4 : vector<32x128xf32>
    %cst_5 = arith.constant 0.000000e+00 : f32
    %6 = vector.broadcast %cst_5 : f32 to vector<32x128xf32>
    %7 = arith.maximumf %5, %6 : vector<32x128xf32>
    %8 = arith.truncf %7 : vector<32x128xf32> to vector<32x128xbf16>
    %c0_6 = arith.constant 0 : index
    %c0_7 = arith.constant 0 : index
    %9 = vector.load %arg4[%c0_6, %c0_7] : memref<32x32xbf16, #tpu.memory_space<vmem>>, vector<32x32xbf16>
    %cst_8 = arith.constant dense<0.000000e+00> : vector<32x128xf32>
    %10 = tpu.matmul %9, %8, %cst_8 {dimension_numbers = #tpu.dot_dimension_numbers<[1], [0], [0], [1], [0, 0, 1, 1], [], []>} : vector<32x32xbf16>, vector<32x128xbf16>, vector<32x128xf32> -> vector<32x128xf32>
    %c0_9 = arith.constant 0 : index
    %c0_10 = arith.constant 0 : index
    %11 = vector.load %arg5[%c0_9, %c0_10] : memref<32x1xf32, #tpu.memory_space<vmem>>, vector<32x1xf32>
    %12 = vector.broadcast %11 : vector<32x1xf32> to vector<32x128xf32>
    %13 = arith.addf %10, %12 : vector<32x128xf32>
    %cst_11 = arith.constant 0.000000e+00 : f32
    %14 = vector.broadcast %cst_11 : f32 to vector<32x128xf32>
    %15 = arith.maximumf %13, %14 : vector<32x128xf32>
    %c0_12 = arith.constant 0 : index
    %c0_13 = arith.constant 0 : index
    %16 = vector.load %arg6[%c0_12, %c0_13] : memref<32x1xf32, #tpu.memory_space<vmem>>, vector<32x1xf32>
    %17 = vector.broadcast %16 : vector<32x1xf32> to vector<32x128xf32>
    %18 = arith.mulf %15, %17 : vector<32x128xf32>
    %cst_14 = arith.constant dense<0.000000e+00> : vector<128xf32>
    %19 = vector.multi_reduction <add>, %18, %cst_14 [0] : vector<32x128xf32> to vector<128xf32>
    %20 = vector.shape_cast %19 : vector<128xf32> to vector<1x128xf32>
    %c0_15 = arith.constant 0 : index
    %21 = memref.load %arg7[%c0_15] : memref<1xf32, #tpu.memory_space<smem>>
    %22 = vector.broadcast %21 : f32 to vector<1x128xf32>
    %23 = arith.addf %20, %22 : vector<1x128xf32>
    %c0_16 = arith.constant 0 : index
    %c0_17 = arith.constant 0 : index
    %24 = vector.load %arg8[%c0_16, %c0_17] : memref<1x128xf32, #tpu.memory_space<vmem>>, vector<1x128xf32>
    tpu.vector_store %arg8[%c0_16, %c0_17], %23 {strides = array<i32>} : memref<1x128xf32, #tpu.memory_space<vmem>>, vector<1x128xf32>,
    return
  }
  func.func @transform_0(%arg0: i32) -> (i32, i32) {
    %c0_i32 = arith.constant 0 : i32
    %c0_i32_0 = arith.constant 0 : i32
    return %c0_i32, %arg0 : i32, i32
  }
  func.func @transform_1(%arg0: i32) -> (i32, i32) {
    %c0_i32 = arith.constant 0 : i32
    %c0_i32_0 = arith.constant 0 : i32
    %c0_i32_1 = arith.constant 0 : i32
    return %c0_i32, %c0_i32_0 : i32, i32
  }
  func.func @transform_2(%arg0: i32) -> (i32, i32) {
    %c0_i32 = arith.constant 0 : i32
    %c0_i32_0 = arith.constant 0 : i32
    %c0_i32_1 = arith.constant 0 : i32
    return %c0_i32, %c0_i32_0 : i32, i32
  }
  func.func @transform_3(%arg0: i32) -> (i32, i32) {
    %c0_i32 = arith.constant 0 : i32
    %c0_i32_0 = arith.constant 0 : i32
    %c0_i32_1 = arith.constant 0 : i32
    return %c0_i32, %c0_i32_0 : i32, i32
  }
  func.func @transform_4(%arg0: i32) -> (i32, i32) {
    %c0_i32 = arith.constant 0 : i32
    %c0_i32_0 = arith.constant 0 : i32
    %c0_i32_1 = arith.constant 0 : i32
    return %c0_i32, %c0_i32_0 : i32, i32
  }
  func.func @transform_5(%arg0: i32) -> (i32, i32) {
    %c0_i32 = arith.constant 0 : i32
    %c0_i32_0 = arith.constant 0 : i32
    %c0_i32_1 = arith.constant 0 : i32
    return %c0_i32, %c0_i32_0 : i32, i32
  }
  func.func @transform_6(%arg0: i32) -> i32 {
    %c0_i32 = arith.constant 0 : i32
    %c0_i32_0 = arith.constant 0 : i32
    return %c0_i32 : i32
  }
  func.func @transform_7(%arg0: i32) -> (i32, i32) {
    %c0_i32 = arith.constant 0 : i32
    %c0_i32_0 = arith.constant 0 : i32
    return %c0_i32, %arg0 : i32, i32
  }
}

</mosaic_0001>

<bundles_post_ra>
// kernel: tpu_custom_call.1
= control target key start
LH: loop header
LB: loop body
LE: loop exit
PB: predicated region body
PF: predicated region fallthrough
CT: control target
= control target key end

     0   :  { %vm75_vm0 = vcmask 130048   ;;  %v351_v3 = vmov 0   ;;  %s452_s0 = inlined_call_operand.vmem [shape: bf16[16,128], index: 0, kind: input, shape index: {}]   ;;  %s453_s1 = inlined_call_operand.vmem [shape: bf16[32,16], index: 1, kind: input, shape index: {}]   ;;  %s454_s2 = inlined_call_operand.vmem [shape: f32[32,1], index: 2, kind: input, shape index: {}]   ;;  %s455_s3 = inlined_call_operand.vmem [shape: bf16[32,32], index: 3, kind: input, shape index: {}]   ;;  %s456_s4 = inlined_call_operand.vmem [shape: f32[32,1], index: 4, kind: input, shape index: {}]   ;;  %s457_s5 = inlined_call_operand.vmem [shape: f32[32,1], index: 5, kind: input, shape index: {}]   ;;  %s458_s6 = inlined_call_operand.<no memory space> [shape: f32[1], index: 6, kind: input, shape index: {}]   ;;  %s459_s7 = inlined_call_operand.hbm [shape: f32[1,128], index: 7, kind: output, shape index: {}]  }
   0x1   :  { %v324_v0 = vld [vmem:[%s452_s0] sm:$0xff]   ;;  %v326_v2 = vld [vmem:[%s453_s1 + $0x8] sm:$0xff]   ;;  %322 = vset.pattern.permute.xlu0 %v351_v3  ;;  %v37_v4 = vld [vmem:[%s454_s2 + $0x10] sm:$0xff]  ;;  %323 = vset.pattern.permute.xlu1 %v351_v3 }
   0x2   :  { %v325_v1 = vld [vmem:[%s453_s1] sm:$0xff]   ;;  %306 = vmatprep.subr.bf16.mxu0 %v324_v0  ;;  %51 = vperm.xlu0 %322, %v37_v4   ;;  %v38_v6 = vld [vmem:[%s454_s2 + $0x18] sm:$0xff]  ;;  %v36_v7 = vld [vmem:[%s454_s2 + $0x8] sm:$0xff] }
   0x3   :  { %307 = vmatpush3.bf16.msra.mxu0 %v324_v0  ;;  %308 = vmatprep.mubr.msk.bf16.mxu0 %vm75_vm0, %v325_v1  ;;  %v35_v5 = vld [vmem:[%s454_s2] sm:$0xff] }
   0x4   :  { %41 = vperm.xlu1 %323, %v35_v5  }
   0x6   :  { %309 = vmatmul.mubr.msk.bf16.vlgmr.msra.gmra.mxu0 %vm75_vm0, %v326_v2  ;;  %56 = vperm.xlu0 %322, %v38_v6  }
   0x7   :  { %13 = vsyncpa [#allocation4], 0  ;;  %v141_v8 = vld [vmem:[%s456_s4] sm:$0xff]  ;;  %v142_v9 = vld [vmem:[%s456_s4 + $0x8] sm:$0xff]  ;;  %vm175_vm1 = vcmask 261120   ;;  %v273_v4 = vstv %s458_s6  ;;  %s352_s8 = smov [#allocation3]  }
   0x8   :  { %46 = vperm.xlu1 %323, %v36_v7   ;;  %v143_v10 = vld [vmem:[%s456_s4 + $0x10] sm:$0xff]  ;;  %v144_v11 = vld [vmem:[%s456_s4 + $0x18] sm:$0xff]  ;;  %v235_v12 = vld [vmem:[%s457_s5] sm:$0xff]  ;;  %s282_s9 = sshll.u32 %s352_s8, 4  ;;  %s283_s9 = int_to_ptr.vmem [resolvable:$true] %s282_s9 }
   0x9   :  { %v236_v13 = vld [vmem:[%s457_s5 + $0x8] sm:$0xff]  ;;  %v237_v14 = vld [vmem:[%s457_s5 + $0x10] sm:$0xff]  ;;  %v238_v15 = vld [vmem:[%s457_s5 + $0x18] sm:$0xff]  ;;  %s329_s0 = scalar_lea.vmem %s283_s9, 16  ;;  %s333_s10 = scalar_lea.vmem %s283_s9, 32 }
   0xa   :  { %147 = vperm.xlu0 %322, %v141_v8   ;;  %v327_v16 = vld [vmem:[%s455_s3] sm:$0xff]   ;;  %v328_v35 = vld [vmem:[%s455_s3 + $0x8] sm:$0xff]   ;;  %p330_p0 = scmp.ne.s32.totalorder %s283_s9, %s329_s0  ;;  %p334_p1 = scmp.lt.s32.totalorder %s283_s9, %s283_s9 }
   0xb   :  { %316 = vmatprep.mubr.msk.bf16.mxu1 %vm175_vm1, %v327_v16  ;;  %p335_p2 = scmp.lt.s32.totalorder %s333_s10, %s329_s0 }
   0xc   :  { %152 = vperm.xlu1 %323, %v142_v9  }
   0xd   :  { %p336_p3 = por %p335_p2, %p334_p1 }
   0xe   :  { %157 = vperm.xlu0 %322, %v143_v10  }
   0xf   :  { %p337_p4 = pnand %p336_p3, %p330_p0 }
  0x10   :  { %162 = vperm.xlu1 %323, %v144_v11  }
  0x12   :  { %241 = vperm.xlu0 %322, %v235_v12  }
  0x14   :  { %246 = vperm.xlu1 %323, %v236_v13  }
  0x16   :  { %251 = vperm.xlu0 %322, %v237_v14  }
  0x18   :  { %256 = vperm.xlu1 %323, %v238_v15  }
  0x7d   :  { %v52_v17 = vpop.permute.xlu0 %51 }
  0x7f   :  { %v42_v18 = vpop.permute.xlu1 %41 }
  0x81   :  { %v57_v22 = vpop.permute.xlu0 %56 }
  0x83   :  { %v47_v26 = vpop.permute.xlu1 %46 }
  0x85   :  { %v148_v36 = vpop.permute.xlu0 %147 }
  0x87   :  { %v153_v37 = vpop.permute.xlu1 %152 }
  0x89   :  { %v158_v38 = vpop.permute.xlu0 %157 }
  0x8b   :  { %v163_v40 = vpop.permute.xlu1 %162 }
  0x8d   :  { %v242_v45 = vpop.permute.xlu0 %241 }
  0x8f   :  { %v247_v50 = vpop.permute.xlu1 %246 }
  0x91   :  { %v252_v56 = vpop.permute.xlu0 %251 }
  0x93   :  { %v257_v59 = vpop.permute.xlu1 %256 }
  0xc6   :  { %v310_v19 = vpop.f32.mrf.mxu0 }
  0xc7   :  { %v125_v21 = vadd.f32 %v310_v19, %v52_v17 }
  0xc8   :  { %v116_v20 = vpop.f32.mrf.mxu0 }
  0xc9   :  { %v117_v24 = vadd.f32 %v116_v20, %v42_v18  ;;  %v133_v28 = vmax.f32 %v125_v21, 0.0 }
  0xca   :  { %v311_v23 = vpop.f32.mrf.mxu0 }
  0xcb   :  { %v128_v25 = vadd.f32 %v311_v23, %v57_v22  ;;  %v131_v31 = vmax.f32 %v117_v24, 0.0 }
  0xcc   :  { %v119_v27 = vpop.f32.mrf.mxu0 }
  0xcd   :  { %v134_v29 = vmax.f32 %v128_v25, 0.0  ;;  %v120_v30 = vadd.f32 %v119_v27, %v47_v26 }
  0xcf   :  { %v132_v32 = vmax.f32 %v120_v30, 0.0  ;;  %v136_v33 = vpack.c.bf16 %v134_v29, %v133_v28 }
  0xd1   :  { %v135_v34 = vpack.c.bf16 %v132_v32, %v131_v31  ;;  %312 = vmatprep.subr.bf16.mxu1 %v136_v33 }
  0xd2   :  { %313 = vmatpush3.bf16.msra.mxu1 %v136_v33 }
  0xd3   :  { %314 = vmatprep.subr.bf16.mxu1 %v135_v34 }
  0xd6   :  { %315 = vmatpush3.bf16.msra.mxu1 %v135_v34 }
  0xd9   :  { %317 = vmatmul.mubr.msk.bf16.vlgmr.msra.gmra.mxu1 %vm175_vm1, %v328_v35 }
 0x199   :  { %v318_v39 = vpop.f32.mrf.mxu1 }
 0x19a   :  { %v225_v44 = vadd.f32 %v318_v39, %v158_v38 }
 0x19b   :  { %v216_v41 = vpop.f32.mrf.mxu1 }
 0x19c   :  { %v217_v42 = vadd.f32 %v216_v41, %v148_v36  ;;  %v233_v51 = vmax.f32 %v225_v44, 0.0 }
 0x19d   :  { %v319_v43 = vpop.f32.mrf.mxu1 }
 0x19e   :  { %v231_v47 = vmax.f32 %v217_v42, 0.0  ;;  %v228_v48 = vadd.f32 %v319_v43, %v163_v40  ;;  %v261_v57 = vmul.f32 %v252_v56, %v233_v51 }
 0x19f   :  { %v219_v46 = vpop.f32.mrf.mxu1 }
 0x1a0   :  { %v220_v49 = vadd.f32 %v219_v46, %v153_v37  ;;  %v259_v53 = vmul.f32 %v242_v45, %v231_v47  ;;  %v234_v54 = vmax.f32 %v228_v48, 0.0 }
 0x1a2   :  { %v232_v52 = vmax.f32 %v220_v49, 0.0  ;;  %v262_v60 = vmul.f32 %v257_v59, %v234_v54 }
 0x1a4   :  { %v260_v55 = vmul.f32 %v247_v50, %v232_v52 }
 0x1a6   :  { %v263_v58 = vadd.f32 %v260_v55, %v259_v53 }
 0x1a8   :  { %v264_v61 = vadd.f32 %v263_v58, %v261_v57 }
 0x1aa   :  { %v265_v62 = vadd.f32 %v264_v61, %v262_v60 }
 0x1ac   :  { %v266_v63 = vrot.slane %v265_v62, 4 }
 0x1ae   :  { %v267_v0 = vadd.f32 %v266_v63, %v265_v62 }
 0x1b0   :  { %v268_v1 = vrot.slane %v267_v0, 2 }
 0x1b2   :  { %v269_v2 = vadd.f32 %v268_v1, %v267_v0 }
 0x1b4   :  { %v270_v3 = vrot.slane %v269_v2, 1 }
 0x1b6   :  { %v271_v5 = vadd.f32 %v270_v3, %v269_v2 }
 0x1b8   :  { %v274_v6 = vadd.f32 %v273_v4, %v271_v5 }
 0x1ba   :  { %275 = vst [vmem:[#allocation3] sm:$0x1] %v274_v6 }
 0x1bb   :  { %340 = shalt.err (!%p337_p4)
}
 0x1bc   :  { %285 = dma.vmem_to_hbm [thread:$0]  %s283_s9, 16, %s459_s7, [#allocation4]  }
 0x1bd   :  { %349 = dma.done.wait [#allocation4], 16  }
 0x1be   :  { %350 = vsyncadd [#allocation4], 4294967280 }
 0x1bf   :  { %289 = vsyncpa [#allocation4], 1 }

</bundles_post_ra>
